<compile_context>
chip_gen: v6e
topology: v6e:2x2x1
jax: 0.10.0
libtpu: 0.0.40
codegen_flags: <defaults>
</compile_context>

<pallas_src>
import jax
import jax.numpy as jnp
from jax.experimental import pallas as pl
from jax.experimental.pallas import tpu as pltpu

LANES = 128   # TPU lane width


def _round_up(x: int, m: int) -> int:
    return (x + m - 1) // m * m


def _tpu_vmem_bytes() -> int:
    """Physical VMEM per TensorCore; conservative fallback if query fails."""
    try:
        return int(pltpu.get_tpu_info().vmem_capacity_bytes)
    except Exception:
        return 64 * 1024 * 1024            # v7x per-TensorCore VMEM


# ---------------------------------------------------------------------------
# Kernels
# ---------------------------------------------------------------------------
def _store_values(v, out_ref):
    """Store per-row critic values v: [tm, 1] f32 into out_ref: [1, R, 128]."""
    tm = v.shape[0]
    _, rows, lanes = out_ref.shape
    if rows * lanes == tm:
        # Packed lane-dense store: tile-local batch row j -> (j // 128, j % 128).
        # A single small sublane->lane reshape on the XLU; writeback = 4 B/row.
        out_ref[...] = v.reshape(1, rows, lanes).astype(out_ref.dtype)
    else:
        # Small-batch path (rows == tm <= 128): lane-replicated slab; column 0
        # is read on the host.  Total writeback <= 64 KiB, irrelevant.
        out_ref[...] = jnp.broadcast_to(v[None], out_ref.shape).astype(out_ref.dtype)


def _critic_full_kernel(obs_ref, w1_ref, b1_ref, w2_ref, b2_ref, w3_ref, b3_ref,
                        out_ref):
    """net(shared(obs)): Linear(D,H)+ReLU -> Linear(H,H)+ReLU -> Linear(H,1)."""
    # In-kernel cast: obs stays in its native dtype in HBM (no host cast pass).
    x = obs_ref[...].astype(w1_ref.dtype)
    h = jnp.dot(x, w1_ref[...], preferred_element_type=jnp.float32)
    h = jnp.maximum(h + b1_ref[...], 0.0)
    h = jnp.dot(h.astype(w2_ref.dtype), w2_ref[...],
                preferred_element_type=jnp.float32)
    h = jnp.maximum(h + b2_ref[...], 0.0)
    # Head Linear(H, 1): VPU multiply + lane reduction (no wasteful N=1 matmul).
    v = jnp.sum(h * w3_ref[...], axis=-1, keepdims=True) + b3_ref[0, 0]   # [tm,1]
    _store_values(v, out_ref)


def _critic_net_kernel(x_ref, w2_ref, b2_ref, w3_ref, b3_ref, out_ref):
    """net(obs) for the pre_processed=True path (no shared stage)."""
    h = jnp.dot(x_ref[...].astype(w2_ref.dtype), w2_ref[...],
                preferred_element_type=jnp.float32)
    h = jnp.maximum(h + b2_ref[...], 0.0)
    v = jnp.sum(h * w3_ref[...], axis=-1, keepdims=True) + b3_ref[0, 0]
    _store_values(v, out_ref)


# ---------------------------------------------------------------------------
# Host-side wrapper around pallas_call
# ---------------------------------------------------------------------------
def _choose_tile(B: int, vmem_bytes: int, bytes_per_row: int):
    """Return (tm, grid, packed_output)."""
    if B <= LANES:
        # One full-array block of exactly B rows (no padded rows at all).
        return B, 1, False
    # Bigger tiles on 128 MiB parts (v5e/v6e), smaller on 64 MiB v7x.
    tm_cap = 2048 if vmem_bytes >= 96 * 1024 * 1024 else 1024
    budget = int(0.4 * vmem_bytes)          # double-buffered tiles + f32 temps
    while tm_cap > LANES and tm_cap * bytes_per_row > budget:
        tm_cap //= 2
    b128 = _round_up(B, LANES)
    # Cap tm at half the 128-padded batch -> grid >= 2 so ("parallel",) can
    # split the batch loop across v7x's two TensorCores.
    tm = min(tm_cap, max(LANES, (b128 // 2) // LANES * LANES))
    grid = pl.cdiv(B, tm)                   # ragged last block handled by Pallas
    return tm, grid, True


def _run_critic(x, net_params, shared_params=None):
    """Fused critic forward.  x: [B, Din] (any float dtype) -> [B, 1] float32."""
    B, Din = x.shape
    w2 = jnp.asarray(net_params["w2"], jnp.bfloat16)                 # [H, H]
    b2 = jnp.asarray(net_params["b2"], jnp.float32).reshape(1, -1)   # [1, H]
    w3 = jnp.asarray(net_params["w3"], jnp.float32).reshape(1, -1)   # [1, H]
    b3 = jnp.asarray(net_params["b3"], jnp.float32).reshape(1, 1)    # [1, 1] SMEM
    H = w2.shape[1]
    # TODO(synk): if the real critic uses H/Din that are not multiples of 256,
    # pad the weight dims to 256 (128 suffices on v5e) to keep the MXU fed.

    vmem_bytes = _tpu_vmem_bytes()
    bytes_per_row = (2 * Din * x.dtype.itemsize   # double-buffered input tile
                     + 3 * H * 4                  # f32 intermediates
                     + LANES * 4)                 # output slab worst case
    tm, grid, packed = _choose_tile(B, vmem_bytes, bytes_per_row)
    inner = (tm // LANES, LANES) if packed else (tm, LANES)

    # Constant index_map => weight blocks are fetched once and stay VMEM
    # resident for the whole grid.  (pipeline_mode=pl.Buffered(1) would also
    # drop the redundant second buffer — worth flipping on v7x once D,H grow.)
    def resident(shape):
        return pl.BlockSpec(shape, lambda i: (0, 0))

    x_spec = pl.BlockSpec((tm, Din), lambda i: (i, 0))
    out_spec = pl.BlockSpec((1,) + inner, lambda i: (i, 0, 0))
    b3_spec = pl.BlockSpec((1, 1), lambda i: (0, 0),
                           memory_space=pltpu.MemorySpace.SMEM)

    if shared_params is not None:
        w1 = jnp.asarray(shared_params["w1"], jnp.bfloat16)                 # [Din,H]
        b1 = jnp.asarray(shared_params["b1"], jnp.float32).reshape(1, -1)   # [1, H]
        kernel = _critic_full_kernel
        inputs = (x, w1, b1, w2, b2, w3, b3)
        in_specs = [x_spec, resident(w1.shape), resident(b1.shape),
                    resident(w2.shape), resident(b2.shape),
                    resident(w3.shape), b3_spec]
        flops = 2 * grid * tm * (Din * H + H * H + H)
    else:
        kernel = _critic_net_kernel
        inputs = (x, w2, b2, w3, b3)
        in_specs = [x_spec, resident(w2.shape), resident(b2.shape),
                    resident(w3.shape), b3_spec]
        flops = 2 * grid * tm * (H * H + H)

    out_elems = grid * inner[0] * inner[1]
    bytes_accessed = int(sum(a.size * a.dtype.itemsize for a in inputs)
                         + out_elems * 4)

    weight_bytes = sum(a.size * a.dtype.itemsize for a in inputs[1:])
    vmem_need = (2 * weight_bytes                       # default double-buffered
                 + 2 * tm * Din * x.dtype.itemsize      # input tile x2
                 + 2 * inner[0] * inner[1] * 4          # output tile x2
                 + 3 * tm * H * 4)                      # f32 intermediates
    vmem_limit = int(min(max(2 * vmem_need, 16 * 1024 * 1024),
                         int(0.75 * vmem_bytes)))

    out = pl.pallas_call(
        kernel,
        out_shape=jax.ShapeDtypeStruct((grid,) + inner, jnp.float32),
        grid_spec=pltpu.PrefetchScalarGridSpec(
            num_scalar_prefetch=0,
            grid=(grid,),
            in_specs=in_specs,
            out_specs=out_spec),
        compiler_params=pltpu.CompilerParams(
            dimension_semantics=("parallel",),
            vmem_limit_bytes=vmem_limit),
        cost_estimate=pl.CostEstimate(flops=flops, transcendentals=0,
                                      bytes_accessed=bytes_accessed),
    )(*inputs)

    if packed:
        # batch index b = tile*tm + row*128 + lane  ->  flat position b.
        return out.reshape(-1)[:B, None]     # [B, 1]
    return out[0, :B, 0:1]                   # [B, 1]


class MultiStageCriticWrapper:
    """JAX/Pallas port of the PyTorch MultiStageCriticWrapper."""

    def __init__(self, net_params):
        self.net = net_params
        self.shared = None

    def set_modules(self, shared_layers):
        # deepcopy equivalent: JAX arrays are immutable, a tree copy suffices.
        self.shared = jax.tree_util.tree_map(jnp.asarray, shared_layers)

    def forward(self, obs, pre_processed=False):
        if not pre_processed:
            if self.shared is None:
                raise ValueError("call set_modules(shared_layers) before forward()")
            return _run_critic(obs, self.net, self.shared)
        return _run_critic(obs, self.net, None)

    __call__ = forward


# ---------------------------------------------------------------------------
# Reference + demo
# ---------------------------------------------------------------------------
def _reference_forward(x, net_params, shared_params=None):
    """Pure-JAX reference with the same bf16-in / f32-accumulate numerics."""
    if shared_params is not None:
        x = jnp.dot(x.astype(jnp.bfloat16),
                    shared_params["w1"].astype(jnp.bfloat16),
                    preferred_element_type=jnp.float32)
        x = jnp.maximum(x + shared_params["b1"], 0.0)
    h = jnp.dot(x.astype(jnp.bfloat16), net_params["w2"].astype(jnp.bfloat16),
                preferred_element_type=jnp.float32)
    h = jnp.maximum(h + net_params["b2"], 0.0)
    return jnp.sum(h * net_params["w3"], axis=-1, keepdims=True) + net_params["b3"]


if __name__ == "__main__":
    D, H = 256, 256   # MXU/lane-aligned feature dims
    key = jax.random.PRNGKey(0)
    (k_obs, k_obs_big, k_w1, k_b1, k_w2, k_b2, k_w3, k_b3) = jax.random.split(key, 8)

    def uniform_init(k, shape, fan_in):
        bound = 1.0 / (fan_in ** 0.5)
        return jax.random.uniform(k, shape, jnp.float32, -bound, bound)

    shared_params = {                       # shared = Linear(D, H) + ReLU
        "w1": uniform_init(k_w1, (D, H), D),
        "b1": uniform_init(k_b1, (H,), D),
    }
    net_params = {                          # net = Linear(H,H)+ReLU+Linear(H,1)
        "w2": uniform_init(k_w2, (H, H), H),
        "b2": uniform_init(k_b2, (H,), H),
        "w3": uniform_init(k_w3, (H,), H),
        "b3": uniform_init(k_b3, (), H),
    }

    critic = MultiStageCriticWrapper(net_params)
    critic.set_modules(shared_params)

    # --- Small batch (B <= 128): single exact-size block, slab output path ---
    B = 64
    obs = jax.random.normal(k_obs, (B, D), jnp.float32)

    v_full = jax.block_until_ready(critic(obs, pre_processed=False))
    ref_full = _reference_forward(obs, net_params, shared_params)

    obs_pre = jnp.maximum(
        jnp.dot(obs.astype(jnp.bfloat16), shared_params["w1"].astype(jnp.bfloat16),
                preferred_element_type=jnp.float32) + shared_params["b1"], 0.0)
    v_pre = jax.block_until_ready(critic(obs_pre, pre_processed=True))
    ref_pre = _reference_forward(obs_pre, net_params, None)

    assert v_full.shape == (B, 1) and v_pre.shape == (B, 1)
    assert jnp.allclose(v_full, ref_full, rtol=2e-2, atol=2e-2), \
        float(jnp.max(jnp.abs(v_full - ref_full)))
    assert jnp.allclose(v_pre, ref_pre, rtol=2e-2, atol=2e-2), \
        float(jnp.max(jnp.abs(v_pre - ref_pre)))

    # --- Larger non-128-multiple batch: packed lane-dense output, ragged last
    #     input block, >= 2 grid steps (v7x megacore) ---
    B_big = 320
    obs_big = jax.random.normal(k_obs_big, (B_big, D), jnp.float32)
    v_big = jax.block_until_ready(critic(obs_big, pre_processed=False))
    ref_big = _reference_forward(obs_big, net_params, shared_params)
    assert v_big.shape == (B_big, 1)
    assert jnp.allclose(v_big, ref_big, rtol=2e-2, atol=2e-2), \
        float(jnp.max(jnp.abs(v_big - ref_big)))

    print("KERNEL_OK")
</pallas_src>

<mosaic_0001>
module attributes {stable_mosaic.version = 11 : i64} {
  func.func @_critic_full_kernel(%arg0: i32, %arg1: memref<64x256xf32, #tpu.memory_space<vmem>>, %arg2: memref<256x256xbf16, #tpu.memory_space<vmem>>, %arg3: memref<1x256xf32, #tpu.memory_space<vmem>>, %arg4: memref<256x256xbf16, #tpu.memory_space<vmem>>, %arg5: memref<1x256xf32, #tpu.memory_space<vmem>>, %arg6: memref<1x256xf32, #tpu.memory_space<vmem>>, %arg7: memref<1x1xf32, #tpu.memory_space<smem>>, %arg8: memref<1x64x128xf32, #tpu.memory_space<vmem>>) attributes {dimension_semantics = [#tpu.dimension_semantics<parallel>], iteration_bounds = array<i64: 1>, scalar_prefetch = 0 : i64, scratch_operands = 0 : i64, tpu.core_type = #tpu.core_type<tc>, window_params = [{transform_indices = @transform_0, window_bounds = array<i64: 64, 256>}, {pipeline_mode = #tpu.pipeline_mode<synchronous>, transform_indices = @transform_1, window_bounds = array<i64: 256, 256>}, {pipeline_mode = #tpu.pipeline_mode<synchronous>, transform_indices = @transform_2, window_bounds = array<i64: 1, 256>}, {pipeline_mode = #tpu.pipeline_mode<synchronous>, transform_indices = @transform_3, window_bounds = array<i64: 256, 256>}, {pipeline_mode = #tpu.pipeline_mode<synchronous>, transform_indices = @transform_4, window_bounds = array<i64: 1, 256>}, {pipeline_mode = #tpu.pipeline_mode<synchronous>, transform_indices = @transform_5, window_bounds = array<i64: 1, 256>}, {transform_indices = @transform_6, window_bounds = array<i64: 1, 1>}, {transform_indices = @transform_7, window_bounds = array<i64: 1, 64, 128>}]} {
    %c0 = arith.constant 0 : index
    %c0_0 = arith.constant 0 : index
    %0 = vector.load %arg1[%c0, %c0_0] : memref<64x256xf32, #tpu.memory_space<vmem>>, vector<64x256xf32>
    %1 = arith.truncf %0 : vector<64x256xf32> to vector<64x256xbf16>
    %c0_1 = arith.constant 0 : index
    %c0_2 = arith.constant 0 : index
    %2 = vector.load %arg2[%c0_1, %c0_2] : memref<256x256xbf16, #tpu.memory_space<vmem>>, vector<256x256xbf16>
    %cst = arith.constant dense<0.000000e+00> : vector<64x256xf32>
    %3 = tpu.matmul %1, %2, %cst {dimension_numbers = #tpu.dot_dimension_numbers<[1], [0], [0], [1], [0, 0, 1, 1], [], []>} : vector<64x256xbf16>, vector<256x256xbf16>, vector<64x256xf32> -> vector<64x256xf32>
    %c0_3 = arith.constant 0 : index
    %c0_4 = arith.constant 0 : index
    %4 = vector.load %arg3[%c0_3, %c0_4] : memref<1x256xf32, #tpu.memory_space<vmem>>, vector<1x256xf32>
    %5 = vector.broadcast %4 : vector<1x256xf32> to vector<64x256xf32>
    %6 = arith.addf %3, %5 : vector<64x256xf32>
    %cst_5 = arith.constant 0.000000e+00 : f32
    %7 = vector.broadcast %cst_5 : f32 to vector<64x256xf32>
    %8 = arith.maximumf %6, %7 : vector<64x256xf32>
    %9 = arith.truncf %8 : vector<64x256xf32> to vector<64x256xbf16>
    %c0_6 = arith.constant 0 : index
    %c0_7 = arith.constant 0 : index
    %10 = vector.load %arg4[%c0_6, %c0_7] : memref<256x256xbf16, #tpu.memory_space<vmem>>, vector<256x256xbf16>
    %cst_8 = arith.constant dense<0.000000e+00> : vector<64x256xf32>
    %11 = tpu.matmul %9, %10, %cst_8 {dimension_numbers = #tpu.dot_dimension_numbers<[1], [0], [0], [1], [0, 0, 1, 1], [], []>} : vector<64x256xbf16>, vector<256x256xbf16>, vector<64x256xf32> -> vector<64x256xf32>
    %c0_9 = arith.constant 0 : index
    %c0_10 = arith.constant 0 : index
    %12 = vector.load %arg5[%c0_9, %c0_10] : memref<1x256xf32, #tpu.memory_space<vmem>>, vector<1x256xf32>
    %13 = vector.broadcast %12 : vector<1x256xf32> to vector<64x256xf32>
    %14 = arith.addf %11, %13 : vector<64x256xf32>
    %cst_11 = arith.constant 0.000000e+00 : f32
    %15 = vector.broadcast %cst_11 : f32 to vector<64x256xf32>
    %16 = arith.maximumf %14, %15 : vector<64x256xf32>
    %c0_12 = arith.constant 0 : index
    %c0_13 = arith.constant 0 : index
    %17 = vector.load %arg6[%c0_12, %c0_13] : memref<1x256xf32, #tpu.memory_space<vmem>>, vector<1x256xf32>
    %18 = vector.broadcast %17 : vector<1x256xf32> to vector<64x256xf32>
    %19 = arith.mulf %16, %18 : vector<64x256xf32>
    %cst_14 = arith.constant dense<0.000000e+00> : vector<64xf32>
    %20 = vector.multi_reduction <add>, %19, %cst_14 [1] : vector<64x256xf32> to vector<64xf32>
    %21 = vector.shape_cast %20 : vector<64xf32> to vector<64x1xf32>
    %c0_15 = arith.constant 0 : index
    %c0_16 = arith.constant 0 : index
    %22 = memref.load %arg7[%c0_15, %c0_16] : memref<1x1xf32, #tpu.memory_space<smem>>
    %23 = vector.broadcast %22 : f32 to vector<64x1xf32>
    %24 = arith.addf %21, %23 : vector<64x1xf32>
    %25 = vector.shape_cast %24 : vector<64x1xf32> to vector<1x64x1xf32>
    %26 = vector.shape_cast %25 : vector<1x64x1xf32> to vector<1x64x1xf32>
    %27 = vector.broadcast %26 : vector<1x64x1xf32> to vector<1x64x128xf32>
    %c0_17 = arith.constant 0 : index
    %c0_18 = arith.constant 0 : index
    %c0_19 = arith.constant 0 : index
    %28 = vector.load %arg8[%c0_17, %c0_18, %c0_19] : memref<1x64x128xf32, #tpu.memory_space<vmem>>, vector<1x64x128xf32>
    tpu.vector_store %arg8[%c0_17, %c0_18, %c0_19], %27 {strides = array<i32>} : memref<1x64x128xf32, #tpu.memory_space<vmem>>, vector<1x64x128xf32>,
    return
  }
  func.func @transform_0(%arg0: i32) -> (i32, i32) {
    %c0_i32 = arith.constant 0 : i32
    %c0_i32_0 = arith.constant 0 : i32
    return %arg0, %c0_i32 : i32, i32
  }
  func.func @transform_1(%arg0: i32) -> (i32, i32) {
    %c0_i32 = arith.constant 0 : i32
    %c0_i32_0 = arith.constant 0 : i32
    %c0_i32_1 = arith.constant 0 : i32
    return %c0_i32, %c0_i32_0 : i32, i32
  }
  func.func @transform_2(%arg0: i32) -> (i32, i32) {
    %c0_i32 = arith.constant 0 : i32
    %c0_i32_0 = arith.constant 0 : i32
    %c0_i32_1 = arith.constant 0 : i32
    return %c0_i32, %c0_i32_0 : i32, i32
  }
  func.func @transform_3(%arg0: i32) -> (i32, i32) {
    %c0_i32 = arith.constant 0 : i32
    %c0_i32_0 = arith.constant 0 : i32
    %c0_i32_1 = arith.constant 0 : i32
    return %c0_i32, %c0_i32_0 : i32, i32
  }
  func.func @transform_4(%arg0: i32) -> (i32, i32) {
    %c0_i32 = arith.constant 0 : i32
    %c0_i32_0 = arith.constant 0 : i32
    %c0_i32_1 = arith.constant 0 : i32
    return %c0_i32, %c0_i32_0 : i32, i32
  }
  func.func @transform_5(%arg0: i32) -> (i32, i32) {
    %c0_i32 = arith.constant 0 : i32
    %c0_i32_0 = arith.constant 0 : i32
    %c0_i32_1 = arith.constant 0 : i32
    return %c0_i32, %c0_i32_0 : i32, i32
  }
  func.func @transform_6(%arg0: i32) -> (i32, i32) {
    %c0_i32 = arith.constant 0 : i32
    %c0_i32_0 = arith.constant 0 : i32
    %c0_i32_1 = arith.constant 0 : i32
    return %c0_i32, %c0_i32_0 : i32, i32
  }
  func.func @transform_7(%arg0: i32) -> (i32, i32, i32) {
    %c0_i32 = arith.constant 0 : i32
    %c0_i32_0 = arith.constant 0 : i32
    %c0_i32_1 = arith.constant 0 : i32
    return %arg0, %c0_i32, %c0_i32_0 : i32, i32, i32
  }
}

</mosaic_0001>

<bundles_post_ra>
// kernel: tpu_custom_call.1
= control target key start
LH: loop header
LB: loop body
LE: loop exit
PB: predicated region body
PF: predicated region fallthrough
CT: control target
= control target key end

     0   :  { %13 = vsyncpa [#allocation4], 0  ;;  %s1160_s0 = inlined_call_operand.hbm [shape: f32[64,256], index: 0, kind: input, shape index: {}]   ;;  %s1161_s1 = inlined_call_operand.hbm [shape: bf16[256,256], index: 1, kind: input, shape index: {}]   ;;  %s1162_s2 = inlined_call_operand.vmem [shape: f32[1,256], index: 2, kind: input, shape index: {}]   ;;  %s1163_s3 = inlined_call_operand.hbm [shape: bf16[256,256], index: 3, kind: input, shape index: {}]   ;;  %s1164_s4 = inlined_call_operand.vmem [shape: f32[1,256], index: 4, kind: input, shape index: {}]   ;;  %s1165_s5 = inlined_call_operand.vmem [shape: f32[1,256], index: 5, kind: input, shape index: {}]   ;;  %s1166_s6 = inlined_call_operand.<no memory space> [shape: f32[1,1], index: 6, kind: input, shape index: {}]   ;;  %s1167_s7 = inlined_call_operand.hbm [shape: f32[1,64,128], index: 7, kind: output, shape index: {}]  }
   0x1   :  { %14 = vsyncpa [#allocation7], 0 }
   0x2   :  { %15 = vsyncpa [#allocation5], 0  ;;  %s1029_s24 = smov [#allocation6]  }
   0x3   :  { %s33_s25 = sshll.u32 %s1029_s24, 4  ;;  %s34_s25 = int_to_ptr.vmem [resolvable:$true] %s33_s25 }
   0x4   :  { %s951_s26 = scalar_lea.vmem %s34_s25, 4096  ;;  %p956_p1 = scmp.lt.s32.totalorder %s34_s25, %s34_s25 }
   0x5   :  { %p952_p0 = scmp.ne.s32.totalorder %s34_s25, %s951_s26  ;;  %p957_p2 = scmp.lt.s32.totalorder %s951_s26, %s951_s26 }
   0x7   :  { %p958_p3 = por %p957_p2, %p956_p1 }
   0x9   :  { %p959_p4 = pnand %p958_p3, %p952_p0 }
   0xb   :  { %962 = shalt.err (!%p959_p4)
}
   0xc   :  { %s1030_s27 = smov 128   ;;  %s1031_s28 = smov 8  }
   0xd   :  { %39 = dma.hbm_to_vmem [thread:$0]  %s1161_s1, 4096, %s34_s25, [#allocation7], %s1030_s27, %s1030_s27, %s1031_s28  }
   0xe   :  { %s1032_s8 = smov [#allocation3]  }
   0xf   :  { %s21_s9 = sshll.u32 %s1032_s8, 4  ;;  %s22_s9 = int_to_ptr.vmem [resolvable:$true] %s21_s9 }
  0x10   :  { %s971_s10 = scalar_lea.vmem %s22_s9, 2048  ;;  %p976_p6 = scmp.lt.s32.totalorder %s22_s9, %s22_s9 }
  0x11   :  { %p972_p5 = scmp.ne.s32.totalorder %s22_s9, %s971_s10  ;;  %p977_p7 = scmp.lt.s32.totalorder %s971_s10, %s971_s10 }
  0x13   :  { %p978_p8 = por %p977_p7, %p976_p6 }
  0x15   :  { %p979_p9 = pnand %p978_p8, %p972_p5 }
  0x17   :  { %982 = shalt.err (!%p979_p9)
}
  0x18   :  { %s1033_s11 = smov 256   ;;  %s1034_s12 = smov 16  }
  0x19   :  { %27 = dma.hbm_to_vmem [thread:$0]  %s1160_s0, 2048, %s22_s9, [#allocation4], %s1033_s11, %s1033_s11, %s1034_s12  }
  0x1a   :  { %s1035_s15 = smov [#allocation8]  }
  0x1b   :  { %s47_s16 = sshll.u32 %s1035_s15, 4  ;;  %s48_s16 = int_to_ptr.vmem [resolvable:$true] %s47_s16 }
  0x1c   :  { %s991_s1 = scalar_lea.vmem %s48_s16, 4096  ;;  %p996_p11 = scmp.lt.s32.totalorder %s48_s16, %s48_s16 }
  0x1d   :  { %p992_p10 = scmp.ne.s32.totalorder %s48_s16, %s991_s1  ;;  %p997_p12 = scmp.lt.s32.totalorder %s991_s1, %s991_s1 }
  0x1f   :  { %p998_p13 = por %p997_p12, %p996_p11 }
  0x21   :  { %p999_p0 = pnand %p998_p13, %p992_p10 }
  0x23   :  { %1002 = shalt.err (!%p999_p0)
}
  0x24   :  { %53 = dma.hbm_to_vmem [thread:$0]  %s1163_s3, 4096, %s48_s16, [#allocation7], %s1030_s27, %s1030_s27, %s1031_s28  }
  0x25   :  { %1023 = dma.done.wait [#allocation4], 2048  }
  0x26   :  { %1024 = vsyncadd [#allocation4], 4294965248 }
  0x27   :  { %1025 = dma.done.wait [#allocation7], 8192  }
  0x28   :  { %1026 = vsyncadd [#allocation7], 4294959104  ;;  %v847_v0 = vld [vmem:[#allocation6 + $0x74] ss:$8 sps:$4 sm:$0xff]   ;;  %v849_v1 = vld [vmem:[#allocation6 + $0x70] ss:$8 sps:$4 sm:$0xff]  }
  0x29   :  { %297 = vmatprep.subr.bf16.mxu0 %v847_v0  ;;  %v850_v2 = vld [vmem:[#allocation6 + $0x64] ss:$8 sps:$4 sm:$0xff]   ;;  %v852_v3 = vld [vmem:[#allocation6 + $0x60] ss:$8 sps:$4 sm:$0xff]   ;;  %v853_v4 = vld [vmem:[#allocation6 + $0x54] ss:$8 sps:$4 sm:$0xff]  }
  0x2a   :  { %298 = vmatpush1.bf16.msra.mxu0 %v849_v1  ;;  %v855_v5 = vld [vmem:[#allocation6 + $0x50] ss:$8 sps:$4 sm:$0xff]   ;;  %v856_v6 = vld [vmem:[#allocation6 + $0x44] ss:$8 sps:$4 sm:$0xff]   ;;  %v858_v7 = vld [vmem:[#allocation6 + $0x40] ss:$8 sps:$4 sm:$0xff]  }
  0x2b   :  { %299 = vmatprep.subr.bf16.mxu0 %v850_v2  ;;  %v859_v8 = vld [vmem:[#allocation6 + $0x34] ss:$8 sps:$4 sm:$0xff]   ;;  %v861_v9 = vld [vmem:[#allocation6 + $0x30] ss:$8 sps:$4 sm:$0xff]   ;;  %v862_v10 = vld [vmem:[#allocation6 + $0x24] ss:$8 sps:$4 sm:$0xff]  }
  0x2c   :  { %v864_v11 = vld [vmem:[#allocation6 + $0x20] ss:$8 sps:$4 sm:$0xff]   ;;  %v865_v12 = vld [vmem:[#allocation6 + $0x14] ss:$8 sps:$4 sm:$0xff]   ;;  %v867_v16 = vld [vmem:[#allocation6 + $0x10] ss:$8 sps:$4 sm:$0xff]  }
  0x2d   :  { %v70_v13 = vld [vmem:[#allocation3 + $0x8] sm:$0xff]  ;;  %v72_v14 = vld [vmem:[#allocation3 + $0x18] sm:$0xff]  ;;  %v69_v53 = vld [vmem:[#allocation3] sm:$0xff] }
  0x2e   :  { %300 = vmatpush1.bf16.msra.mxu0 %v852_v3  ;;  %v86_v15 = vpack.c.bf16 %v72_v14, %v70_v13  ;;  %v868_v17 = vld [vmem:[#allocation6 + $0x4] ss:$8 sps:$4 sm:$0xff]   ;;  %v870_v18 = vld [vmem:[#allocation6] ss:$8 sps:$4 sm:$0xff]   ;;  %v871_v19 = vld [vmem:[#allocation6 + $0xf4] ss:$8 sps:$4 sm:$0xff]  }
  0x2f   :  { %301 = vmatprep.subr.bf16.mxu0 %v853_v4  ;;  %v895_v20 = vld [vmem:[#allocation8 + $0x74] ss:$8 sps:$4 sm:$0xff]   ;;  %v897_v21 = vld [vmem:[#allocation8 + $0x70] ss:$8 sps:$4 sm:$0xff]   ;;  %v898_v22 = vld [vmem:[#allocation8 + $0x64] ss:$8 sps:$4 sm:$0xff]  }
  0x30   :  { %329 = vmatprep.mubr.bf16.mxu0 %v86_v15  ;;  %598 = vmatprep.subr.bf16.mxu1 %v895_v20  ;;  %v900_v23 = vld [vmem:[#allocation8 + $0x60] ss:$8 sps:$4 sm:$0xff]   ;;  %v873_v24 = vld [vmem:[#allocation6 + $0xf0] ss:$8 sps:$4 sm:$0xff]   ;;  %v901_v25 = vld [vmem:[#allocation8 + $0x54] ss:$8 sps:$4 sm:$0xff]  }
  0x31   :  { %599 = vmatpush1.bf16.msra.mxu1 %v897_v21  ;;  %v874_v26 = vld [vmem:[#allocation6 + $0xe4] ss:$8 sps:$4 sm:$0xff]   ;;  %v903_v27 = vld [vmem:[#allocation8 + $0x50] ss:$8 sps:$4 sm:$0xff]   ;;  %v876_v28 = vld [vmem:[#allocation6 + $0xe0] ss:$8 sps:$4 sm:$0xff]  }
  0x32   :  { %302 = vmatpush1.bf16.msra.mxu0 %v855_v5  ;;  %600 = vmatprep.subr.bf16.mxu1 %v898_v22  ;;  %v904_v29 = vld [vmem:[#allocation8 + $0x44] ss:$8 sps:$4 sm:$0xff]   ;;  %v877_v30 = vld [vmem:[#allocation6 + $0xd4] ss:$8 sps:$4 sm:$0xff]   ;;  %v906_v31 = vld [vmem:[#allocation8 + $0x40] ss:$8 sps:$4 sm:$0xff]  }
  0x33   :  { %303 = vmatprep.subr.bf16.mxu0 %v856_v6  ;;  %v879_v32 = vld [vmem:[#allocation6 + $0xd0] ss:$8 sps:$4 sm:$0xff]   ;;  %v907_v33 = vld [vmem:[#allocation8 + $0x34] ss:$8 sps:$4 sm:$0xff]   ;;  %v880_v34 = vld [vmem:[#allocation6 + $0xc4] ss:$8 sps:$4 sm:$0xff]  }
  0x34   :  { %v909_v35 = vld [vmem:[#allocation8 + $0x30] ss:$8 sps:$4 sm:$0xff]   ;;  %v882_v36 = vld [vmem:[#allocation6 + $0xc0] ss:$8 sps:$4 sm:$0xff]   ;;  %v910_v37 = vld [vmem:[#allocation8 + $0x24] ss:$8 sps:$4 sm:$0xff]  }
  0x35   :  { %601 = vmatpush1.bf16.msra.mxu1 %v900_v23  ;;  %v883_v38 = vld [vmem:[#allocation6 + $0xb4] ss:$8 sps:$4 sm:$0xff]   ;;  %v912_v39 = vld [vmem:[#allocation8 + $0x20] ss:$8 sps:$4 sm:$0xff]   ;;  %v885_v40 = vld [vmem:[#allocation6 + $0xb0] ss:$8 sps:$4 sm:$0xff]  }
  0x36   :  { %304 = vmatpush1.bf16.msra.mxu0 %v858_v7  ;;  %602 = vmatprep.subr.bf16.mxu1 %v901_v25  ;;  %v913_v41 = vld [vmem:[#allocation8 + $0x14] ss:$8 sps:$4 sm:$0xff]   ;;  %v886_v42 = vld [vmem:[#allocation6 + $0xa4] ss:$8 sps:$4 sm:$0xff]   ;;  %v915_v43 = vld [vmem:[#allocation8 + $0x10] ss:$8 sps:$4 sm:$0xff]  }
  0x37   :  { %305 = vmatprep.subr.bf16.mxu0 %v859_v8  ;;  %v888_v44 = vld [vmem:[#allocation6 + $0xa0] ss:$8 sps:$4 sm:$0xff]   ;;  %v916_v45 = vld [vmem:[#allocation8 + $0x4] ss:$8 sps:$4 sm:$0xff]   ;;  %v889_v46 = vld [vmem:[#allocation6 + $0x94] ss:$8 sps:$4 sm:$0xff]  }
  0x38   :  { %v918_v47 = vld [vmem:[#allocation8] ss:$8 sps:$4 sm:$0xff]   ;;  %v891_v48 = vld [vmem:[#allocation6 + $0x90] ss:$8 sps:$4 sm:$0xff]   ;;  %v919_v49 = vld [vmem:[#allocation8 + $0xf4] ss:$8 sps:$4 sm:$0xff]  }
  0x39   :  { %603 = vmatpush1.bf16.msra.mxu1 %v903_v27  ;;  %v892_v50 = vld [vmem:[#allocation6 + $0x84] ss:$8 sps:$4 sm:$0xff]   ;;  %v894_v51 = vld [vmem:[#allocation6 + $0x80] ss:$8 sps:$4 sm:$0xff]   ;;  %v921_v52 = vld [vmem:[#allocation8 + $0xf0] ss:$8 sps:$4 sm:$0xff]  }
  0x3a   :  { %306 = vmatpush1.bf16.msra.mxu0 %v861_v9  ;;  %604 = vmatprep.subr.bf16.mxu1 %v904_v29  ;;  %v71_v54 = vld [vmem:[#allocation3 + $0x10] sm:$0xff]  ;;  %v922_v55 = vld [vmem:[#allocation8 + $0xe4] ss:$8 sps:$4 sm:$0xff]   ;;  %v76_v57 = vld [vmem:[#allocation3 + $0x38] sm:$0xff] }
  0x3b   :  { %307 = vmatprep.subr.bf16.mxu0 %v862_v10  ;;  %v74_v56 = vld [vmem:[#allocation3 + $0x28] sm:$0xff]  ;;  %v85_v58 = vpack.c.bf16 %v71_v54, %v69_v53  ;;  %v925_v61 = vld [vmem:[#allocation8 + $0xd4] ss:$8 sps:$4 sm:$0xff]   ;;  %v927_v62 = vld [vmem:[#allocation8 + $0xd0] ss:$8 sps:$4 sm:$0xff]  }
  0x3c   :  { %v924_v59 = vld [vmem:[#allocation8 + $0xe0] ss:$8 sps:$4 sm:$0xff]   ;;  %v88_v60 = vpack.c.bf16 %v76_v57, %v74_v56  ;;  %v75_v0 = vld [vmem:[#allocation3 + $0x30] sm:$0xff]  ;;  %v928_v1 = vld [vmem:[#allocation8 + $0xc4] ss:$8 sps:$4 sm:$0xff]  }
  0x3d   :  { %605 = vmatpush1.bf16.msra.mxu1 %v906_v31  ;;  %v73_v63 = vld [vmem:[#allocation3 + $0x20] sm:$0xff]  ;;  %v78_v2 = vld [vmem:[#allocation3 + $0x48] sm:$0xff]  ;;  %v80_v3 = vld [vmem:[#allocation3 + $0x58] sm:$0xff] }
  0x3e   :  { %308 = vmatpush1.bf16.msra.mxu0 %v864_v11  ;;  %606 = vmatprep.subr.bf16.mxu1 %v907_v33  ;;  %v87_v4 = vpack.c.bf16 %v75_v0, %v73_v63  ;;  %v930_v5 = vld [vmem:[#allocation8 + $0xc0] ss:$8 sps:$4 sm:$0xff]   ;;  %v90_v6 = vpack.c.bf16 %v80_v3, %v78_v2  ;;  %v931_v7 = vld [vmem:[#allocation8 + $0xb4] ss:$8 sps:$4 sm:$0xff]   ;;  %v933_v8 = vld [vmem:[#allocation8 + $0xb0] ss:$8 sps:$4 sm:$0xff]  }
  0x3f   :  { %309 = vmatprep.subr.bf16.mxu0 %v865_v12  ;;  %v77_v9 = vld [vmem:[#allocation3 + $0x40] sm:$0xff]  ;;  %v79_v10 = vld [vmem:[#allocation3 + $0x50] sm:$0xff]  ;;  %v82_v11 = vld [vmem:[#allocation3 + $0x68] sm:$0xff] }
  0x40   :  { %v84_v12 = vld [vmem:[#allocation3 + $0x78] sm:$0xff]  ;;  %v89_v13 = vpack.c.bf16 %v79_v10, %v77_v9  ;;  %v81_v15 = vld [vmem:[#allocation3 + $0x60] sm:$0xff] }
  0x41   :  { %607 = vmatpush1.bf16.msra.mxu1 %v909_v35  ;;  %v92_v14 = vpack.c.bf16 %v84_v12, %v82_v11  ;;  %v937_v20 = vld [vmem:[#allocation8 + $0x94] ss:$8 sps:$4 sm:$0xff]   ;;  %v939_v21 = vld [vmem:[#allocation8 + $0x90] ss:$8 sps:$4 sm:$0xff]   ;;  %v940_v22 = vld [vmem:[#allocation8 + $0x84] ss:$8 sps:$4 sm:$0xff]  }
  0x42   :  { %310 = vmatpush1.bf16.msra.mxu0 %v867_v16  ;;  %608 = vmatprep.subr.bf16.mxu1 %v910_v37  ;;  %v83_v16 = vld [vmem:[#allocation3 + $0x70] sm:$0xff]  ;;  %v942_v23 = vld [vmem:[#allocation8 + $0x80] ss:$8 sps:$4 sm:$0xff]  }
  0x43   :  { %311 = vmatprep.subr.bf16.mxu0 %v868_v17  ;;  %v91_v17 = vpack.c.bf16 %v83_v16, %v81_v15 }
  0x45   :  { %609 = vmatpush1.bf16.msra.mxu1 %v912_v39 }
  0x46   :  { %312 = vmatpush1.bf16.msra.mxu0 %v870_v18  ;;  %610 = vmatprep.subr.bf16.mxu1 %v913_v41  ;;  %v934_v18 = vld [vmem:[#allocation8 + $0xa4] ss:$8 sps:$4 sm:$0xff]  }
  0x47   :  { %313 = vmatprep.subr.bf16.mxu0 %v871_v19  ;;  %v936_v19 = vld [vmem:[#allocation8 + $0xa0] ss:$8 sps:$4 sm:$0xff]  }
  0x49   :  { %611 = vmatpush1.bf16.msra.mxu1 %v915_v43 }
  0x4a   :  { %314 = vmatpush2.bf16.msra.mxu0 %v873_v24  ;;  %612 = vmatprep.subr.bf16.mxu1 %v916_v45  ;;  %v127_v24 = vlaneseq }
  0x4b   :  { %315 = vmatprep.subr.bf16.mxu0 %v874_v26 }
  0x4c   :  { %v128_v25 = vshrl.u32 %v127_v24, 7 }
  0x4d   :  { %613 = vmatpush1.bf16.msra.mxu1 %v918_v47 }
  0x4e   :  { %316 = vmatpush2.bf16.msra.mxu0 %v876_v28  ;;  %614 = vmatprep.subr.bf16.mxu1 %v919_v49  ;;  %v1092_v26 = vsub.s32 1, %v128_v25  ;;  %v1094_v27 = vsub.s32 0, %v128_v25  ;;  %v125_v28 = vld [vmem:[%s1162_s2] sm:$0x3] }
  0x4f   :  { %317 = vmatprep.subr.bf16.mxu0 %v877_v30 }
  0x50   :  { %v134_v30 = vrot.slane %v125_v28, %v1092_v26  ;;  %v130_v31 = vrot.slane %v125_v28, %v1094_v27 }
  0x51   :  { %615 = vmatpush2.bf16.msra.mxu1 %v921_v52 }
  0x52   :  { %318 = vmatpush2.bf16.msra.mxu0 %v879_v32  ;;  %616 = vmatprep.subr.bf16.mxu1 %v922_v55 }
  0x53   :  { %319 = vmatprep.subr.bf16.mxu0 %v880_v34 }
  0x55   :  { %617 = vmatpush2.bf16.msra.mxu1 %v924_v59 }
  0x56   :  { %320 = vmatpush2.bf16.msra.mxu0 %v882_v36  ;;  %618 = vmatprep.subr.bf16.mxu1 %v925_v61 }
  0x57   :  { %321 = vmatprep.subr.bf16.mxu0 %v883_v38 }
  0x59   :  { %619 = vmatpush2.bf16.msra.mxu1 %v927_v62 }
  0x5a   :  { %322 = vmatpush2.bf16.msra.mxu0 %v885_v40  ;;  %620 = vmatprep.subr.bf16.mxu1 %v928_v1 }
  0x5b   :  { %323 = vmatprep.subr.bf16.mxu0 %v886_v42 }
  0x5d   :  { %621 = vmatpush2.bf16.msra.mxu1 %v930_v5 }
  0x5e   :  { %324 = vmatpush2.bf16.msra.mxu0 %v888_v44  ;;  %622 = vmatprep.subr.bf16.mxu1 %v931_v7 }
  0x5f   :  { %325 = vmatprep.subr.bf16.mxu0 %v889_v46 }
  0x61   :  { %623 = vmatpush2.bf16.msra.mxu1 %v933_v8 }
  0x62   :  { %326 = vmatpush2.bf16.msra.mxu0 %v891_v48  ;;  %624 = vmatprep.subr.bf16.mxu1 %v934_v18 }
  0x63   :  { %327 = vmatprep.subr.bf16.mxu0 %v892_v50 }
  0x65   :  { %625 = vmatpush2.bf16.msra.mxu1 %v936_v19 }
  0x66   :  { %328 = vmatpush2.bf16.msra.mxu0 %v894_v51  ;;  %626 = vmatprep.subr.bf16.mxu1 %v937_v20 }
  0x69   :  { %330 = vmatmul.mubr.bf16.vlgmr.msra.gmra.mxu0 %v85_v58  ;;  %627 = vmatpush2.bf16.msra.mxu1 %v939_v21 }
  0x6a   :  { %339 = vmatprep.mubr.bf16.mxu0 %v88_v60  ;;  %628 = vmatprep.subr.bf16.mxu1 %v940_v22 }
  0x6d   :  { %629 = vmatpush2.bf16.msra.mxu1 %v942_v23  ;;  %v426_v23 = vld [vmem:[%s1164_s4] sm:$0x3] }
  0x6e   :  { %v1105_v24 = vrot.slane %v426_v23, %v1094_v27  ;;  %v1108_v25 = vrot.slane %v426_v23, %v1092_v26 }
  0x71   :  { %340 = vmatmul.mubr.bf16.gmra.mxu0 %v87_v4 }
  0x72   :  { %349 = vmatprep.mubr.bf16.mxu0 %v90_v6 }
  0x79   :  { %350 = vmatmul.mubr.bf16.gmra.mxu0 %v89_v13 }
  0x7a   :  { %359 = vmatprep.mubr.bf16.mxu0 %v92_v14 }
  0x81   :  { %360 = vmatmul.mubr.bf16.gmra.mxu0 %v91_v17 }
 0x129   :  { %v331_v29 = vpop.f32.mrf.mxu0 }
 0x12a   :  { %v332_v36 = vadd.f32 %v331_v29, %v130_v31  ;;  %v687_v29 = vld [vmem:[%s1165_s5] sm:$0x3] }
 0x12b   :  { %v333_v32 = vpop.f32.mrf.mxu0 }
 0x12c   :  { %v334_v34 = vadd.f32 %v333_v32, %v134_v30  ;;  %v370_v43 = vmax.f32 %v332_v36, 0.0 }
 0x12d   :  { %v335_v33 = vpop.f32.mrf.mxu0 }
 0x12e   :  { %v336_v35 = vadd.f32 %v335_v33, %v130_v31  ;;  %v371_v41 = vmax.f32 %v334_v34, 0.0  ;;  %v1116_v34 = vrot.slane %v687_v29, %v1094_v27 }
 0x12f   :  { %v337_v37 = vpop.f32.mrf.mxu0 }
 0x130   :  { %v338_v38 = vadd.f32 %v337_v37, %v134_v30  ;;  %v372_v39 = vmax.f32 %v336_v35, 0.0  ;;  %v1119_v35 = vrot.slane %v687_v29, %v1092_v26 }
 0x131   :  { %v341_v40 = vpop.f32.mrf.mxu0 }
 0x132   :  { %v373_v42 = vmax.f32 %v338_v38, 0.0  ;;  %v386_v46 = vpack.c.bf16 %v372_v39, %v370_v43  ;;  %v342_v50 = vadd.f32 %v341_v40, %v130_v31 }
 0x133   :  { %v343_v44 = vpop.f32.mrf.mxu0 }
 0x134   :  { %v387_v45 = vpack.c.bf16 %v373_v42, %v371_v41  ;;  %v344_v48 = vadd.f32 %v343_v44, %v134_v30  ;;  %v374_v57 = vmax.f32 %v342_v50, 0.0 }
 0x135   :  { %v345_v47 = vpop.f32.mrf.mxu0 }
 0x136   :  { %v346_v49 = vadd.f32 %v345_v47, %v130_v31  ;;  %630 = vmatprep.mubr.bf16.mxu1 %v387_v45  ;;  %v375_v55 = vmax.f32 %v344_v48, 0.0 }
 0x137   :  { %v347_v51 = vpop.f32.mrf.mxu0  ;;  %631 = vmatmul.mubr.bf16.vlgmr.msra.gmra.mxu1 %v386_v46 }
 0x138   :  { %v348_v52 = vadd.f32 %v347_v51, %v134_v30  ;;  %v376_v53 = vmax.f32 %v346_v49, 0.0 }
 0x139   :  { %v351_v54 = vpop.f32.mrf.mxu0 }
 0x13a   :  { %v377_v56 = vmax.f32 %v348_v52, 0.0  ;;  %v388_v60 = vpack.c.bf16 %v376_v53, %v374_v57  ;;  %v352_v0 = vadd.f32 %v351_v54, %v130_v31 }
 0x13b   :  { %v353_v58 = vpop.f32.mrf.mxu0 }
 0x13c   :  { %v389_v59 = vpack.c.bf16 %v377_v56, %v375_v55  ;;  %v354_v62 = vadd.f32 %v353_v58, %v134_v30  ;;  %v378_v7 = vmax.f32 %v352_v0, 0.0 }
 0x13d   :  { %v355_v61 = vpop.f32.mrf.mxu0 }
 0x13e   :  { %v356_v63 = vadd.f32 %v355_v61, %v130_v31  ;;  %640 = vmatprep.mubr.bf16.mxu1 %v389_v59  ;;  %v379_v5 = vmax.f32 %v354_v62, 0.0 }
 0x13f   :  { %v357_v1 = vpop.f32.mrf.mxu0  ;;  %641 = vmatmul.mubr.bf16.gmra.mxu1 %v388_v60 }
 0x140   :  { %v358_v2 = vadd.f32 %v357_v1, %v134_v30  ;;  %v380_v3 = vmax.f32 %v356_v63, 0.0 }
 0x141   :  { %v361_v4 = vpop.f32.mrf.mxu0 }
 0x142   :  { %v381_v6 = vmax.f32 %v358_v2, 0.0  ;;  %v390_v10 = vpack.c.bf16 %v380_v3, %v378_v7  ;;  %v362_v14 = vadd.f32 %v361_v4, %v130_v31 }
 0x143   :  { %v363_v8 = vpop.f32.mrf.mxu0 }
 0x144   :  { %v391_v9 = vpack.c.bf16 %v381_v6, %v379_v5  ;;  %v364_v12 = vadd.f32 %v363_v8, %v134_v30  ;;  %v382_v20 = vmax.f32 %v362_v14, 0.0 }
 0x145   :  { %v365_v11 = vpop.f32.mrf.mxu0 }
 0x146   :  { %v366_v13 = vadd.f32 %v365_v11, %v130_v31  ;;  %650 = vmatprep.mubr.bf16.mxu1 %v391_v9  ;;  %v383_v18 = vmax.f32 %v364_v12, 0.0 }
 0x147   :  { %v367_v15 = vpop.f32.mrf.mxu0  ;;  %651 = vmatmul.mubr.bf16.gmra.mxu1 %v390_v10 }
 0x148   :  { %v368_v16 = vadd.f32 %v367_v15, %v134_v30  ;;  %v384_v17 = vmax.f32 %v366_v13, 0.0 }
 0x14a   :  { %v385_v19 = vmax.f32 %v368_v16, 0.0  ;;  %v392_v22 = vpack.c.bf16 %v384_v17, %v382_v20 }
 0x14c   :  { %v393_v21 = vpack.c.bf16 %v385_v19, %v383_v18 }
 0x14e   :  { %660 = vmatprep.mubr.bf16.mxu1 %v393_v21 }
 0x14f   :  { %661 = vmatmul.mubr.bf16.gmra.mxu1 %v392_v22 }
 0x1f7   :  { %v632_v28 = vpop.f32.mrf.mxu1 }
 0x1f8   :  { %v633_v30 = vadd.f32 %v632_v28, %v1105_v24 }
 0x1f9   :  { %v634_v31 = vpop.f32.mrf.mxu1 }
 0x1fa   :  { %v671_v32 = vmax.f32 %v633_v30, 0.0  ;;  %v635_v33 = vadd.f32 %v634_v31, %v1108_v25 }
 0x1fb   :  { %v636_v36 = vpop.f32.mrf.mxu1 }
 0x1fc   :  { %v672_v37 = vmax.f32 %v635_v33, 0.0  ;;  %v637_v38 = vadd.f32 %v636_v36, %v1105_v24  ;;  %v699_v42 = vmul.f32 %v1116_v34, %v671_v32 }
 0x1fd   :  { %v638_v39 = vpop.f32.mrf.mxu1 }
 0x1fe   :  { %v673_v40 = vmax.f32 %v637_v38, 0.0  ;;  %v639_v41 = vadd.f32 %v638_v39, %v1108_v25  ;;  %v700_v43 = vmul.f32 %v1119_v35, %v672_v37 }
 0x1ff   :  { %v642_v44 = vpop.f32.mrf.mxu1 }
 0x200   :  { %v674_v45 = vmax.f32 %v639_v41, 0.0  ;;  %v643_v27 = vadd.f32 %v642_v44, %v1105_v24  ;;  %v715_v46 = vadd.f32 %v700_v43, %v699_v42  ;;  %v701_v26 = vmul.f32 %v1116_v34, %v673_v40 }
 0x201   :  { %v644_v47 = vpop.f32.mrf.mxu1 }
 0x202   :  { %v702_v48 = vmul.f32 %v1119_v35, %v674_v45  ;;  %v675_v49 = vmax.f32 %v643_v27, 0.0  ;;  %v645_v50 = vadd.f32 %v644_v47, %v1108_v25  ;;  %716 = vadd.xlane.f32.xlu0 %v715_v46 }
 0x203   :  { %v646_v51 = vpop.f32.mrf.mxu1 }
 0x204   :  { %v676_v52 = vmax.f32 %v645_v50, 0.0  ;;  %v647_v53 = vadd.f32 %v646_v51, %v1105_v24  ;;  %v718_v54 = vadd.f32 %v702_v48, %v701_v26  ;;  %v703_v58 = vmul.f32 %v1116_v34, %v675_v49 }
 0x205   :  { %v648_v55 = vpop.f32.mrf.mxu1 }
 0x206   :  { %v677_v56 = vmax.f32 %v647_v53, 0.0  ;;  %v649_v57 = vadd.f32 %v648_v55, %v1108_v25  ;;  %719 = vadd.xlane.f32.xlu0 %v718_v54  ;;  %v704_v59 = vmul.f32 %v1119_v35, %v676_v52 }
 0x207   :  { %v652_v60 = vpop.f32.mrf.mxu1 }
 0x208   :  { %v678_v61 = vmax.f32 %v649_v57, 0.0  ;;  %v653_v62 = vadd.f32 %v652_v60, %v1105_v24  ;;  %v721_v63 = vadd.f32 %v704_v59, %v703_v58  ;;  %v705_v1 = vmul.f32 %v1116_v34, %v677_v56 }
 0x209   :  { %v654_v0 = vpop.f32.mrf.mxu1 }
 0x20a   :  { %v706_v2 = vmul.f32 %v1119_v35, %v678_v61  ;;  %v679_v3 = vmax.f32 %v653_v62, 0.0  ;;  %v655_v4 = vadd.f32 %v654_v0, %v1108_v25  ;;  %722 = vadd.xlane.f32.xlu1 %v721_v63 }
 0x20b   :  { %v656_v5 = vpop.f32.mrf.mxu1 }
 0x20c   :  { %v680_v6 = vmax.f32 %v655_v4, 0.0  ;;  %v657_v7 = vadd.f32 %v656_v5, %v1105_v24  ;;  %v724_v8 = vadd.f32 %v706_v2, %v705_v1  ;;  %v707_v10 = vmul.f32 %v1116_v34, %v679_v3 }
 0x20d   :  { %v658_v9 = vpop.f32.mrf.mxu1 }
 0x20e   :  { %v708_v11 = vmul.f32 %v1119_v35, %v680_v6  ;;  %v681_v12 = vmax.f32 %v657_v7, 0.0  ;;  %v659_v13 = vadd.f32 %v658_v9, %v1108_v25  ;;  %725 = vadd.xlane.f32.xlu1 %v724_v8 }
 0x20f   :  { %v662_v14 = vpop.f32.mrf.mxu1 }
 0x210   :  { %v682_v15 = vmax.f32 %v659_v13, 0.0  ;;  %v663_v16 = vadd.f32 %v662_v14, %v1105_v24  ;;  %v727_v17 = vadd.f32 %v708_v11, %v707_v10  ;;  %v709_v19 = vmul.f32 %v1116_v34, %v681_v12 }
 0x211   :  { %v664_v18 = vpop.f32.mrf.mxu1 }
 0x212   :  { %v710_v20 = vmul.f32 %v1119_v35, %v682_v15  ;;  %v683_v21 = vmax.f32 %v663_v16, 0.0  ;;  %v665_v22 = vadd.f32 %v664_v18, %v1108_v25  ;;  %728 = vadd.xlane.f32.xlu0 %v727_v17 }
 0x213   :  { %v666_v23 = vpop.f32.mrf.mxu1 }
 0x214   :  { %v684_v28 = vmax.f32 %v665_v22, 0.0  ;;  %v667_v29 = vadd.f32 %v666_v23, %v1105_v24  ;;  %v730_v30 = vadd.f32 %v710_v20, %v709_v19  ;;  %v711_v32 = vmul.f32 %v1116_v34, %v683_v21 }
 0x215   :  { %v668_v31 = vpop.f32.mrf.mxu1  ;;  %v740_v24 = vstv %s1166_s6  ;;  %s1036_s6 = smov [#allocation9]  }
 0x216   :  { %v712_v33 = vmul.f32 %v1119_v35, %v684_v28  ;;  %v685_v36 = vmax.f32 %v667_v29, 0.0  ;;  %v669_v37 = vadd.f32 %v668_v31, %v1108_v25  ;;  %731 = vadd.xlane.f32.xlu1 %v730_v30  ;;  %s762_s22 = sshll.u32 %s1036_s6, 4  ;;  %s763_s22 = int_to_ptr.vmem [resolvable:$true] %s762_s22 }
 0x217   :  { %s1003_s23 = scalar_lea.vmem %s763_s22, 1024  ;;  %p1008_p2 = scmp.lt.s32.totalorder %s763_s22, %s763_s22 }
 0x218   :  { %v686_v38 = vmax.f32 %v669_v37, 0.0  ;;  %v733_v39 = vadd.f32 %v712_v33, %v711_v32  ;;  %v713_v40 = vmul.f32 %v1116_v34, %v685_v36  ;;  %p1004_p1 = scmp.ne.s32.totalorder %s763_s22, %s1003_s23  ;;  %p1009_p3 = scmp.lt.s32.totalorder %s1003_s23, %s1003_s23 }
 0x21a   :  { %v714_v41 = vmul.f32 %v1119_v35, %v686_v38  ;;  %734 = vadd.xlane.f32.xlu0 %v733_v39  ;;  %p1010_p4 = por %p1009_p3, %p1008_p2 }
 0x21c   :  { %v736_v42 = vadd.f32 %v714_v41, %v713_v40  ;;  %p1011_p5 = pnand %p1010_p4, %p1004_p1 }
 0x21e   :  { %737 = vadd.xlane.f32.xlu1 %v736_v42 }
 0x28b   :  { %v717_v43 = vpop.xlane.xlu0 %716 }
 0x28c   :  { %v741_v44 = vadd.f32 %v740_v24, %v717_v43 }
 0x28e   :  { %749 = vst [vmem:[#allocation9] sm:$0xff] %v741_v44 }
 0x28f   :  { %v720_v45 = vpop.xlane.xlu0 %719 }
 0x290   :  { %v742_v27 = vadd.f32 %v740_v24, %v720_v45 }
 0x292   :  { %750 = vst [vmem:[#allocation9 + $0x8] sm:$0xff] %v742_v27 }
 0x293   :  { %v723_v25 = vpop.xlane.xlu1 %722 }
 0x294   :  { %v743_v46 = vadd.f32 %v740_v24, %v723_v25 }
 0x296   :  { %751 = vst [vmem:[#allocation9 + $0x10] sm:$0xff] %v743_v46 }
 0x297   :  { %v726_v47 = vpop.xlane.xlu1 %725 }
 0x298   :  { %v744_v34 = vadd.f32 %v740_v24, %v726_v47 }
 0x29a   :  { %752 = vst [vmem:[#allocation9 + $0x18] sm:$0xff] %v744_v34 }
 0x29b   :  { %v729_v35 = vpop.xlane.xlu0 %728 }
 0x29c   :  { %v745_v26 = vadd.f32 %v740_v24, %v729_v35 }
 0x29e   :  { %753 = vst [vmem:[#allocation9 + $0x20] sm:$0xff] %v745_v26 }
 0x29f   :  { %v732_v48 = vpop.xlane.xlu1 %731 }
 0x2a0   :  { %v746_v49 = vadd.f32 %v740_v24, %v732_v48 }
 0x2a2   :  { %754 = vst [vmem:[#allocation9 + $0x28] sm:$0xff] %v746_v49 }
 0x2a3   :  { %v735_v50 = vpop.xlane.xlu0 %734 }
 0x2a4   :  { %v747_v51 = vadd.f32 %v740_v24, %v735_v50 }
 0x2a6   :  { %755 = vst [vmem:[#allocation9 + $0x30] sm:$0xff] %v747_v51 }
 0x2a7   :  { %v738_v52 = vpop.xlane.xlu1 %737 }
 0x2a8   :  { %v748_v53 = vadd.f32 %v740_v24, %v738_v52 }
 0x2aa   :  { %756 = vst [vmem:[#allocation9 + $0x38] sm:$0xff] %v748_v53 }
 0x2ab   :  { %1014 = shalt.err (!%p1011_p5)
}
 0x2ac   :  { %768 = dma.vmem_to_hbm [thread:$0]  %s763_s22, 1024, %s1167_s7, [#allocation5], %s1030_s27, %s1030_s27, %s1031_s28  }
 0x2ad   :  { %1027 = dma.done.wait [#allocation5], 1024  }
 0x2ae   :  { %1028 = vsyncadd [#allocation5], 4294966272 }
 0x2af   :  { %772 = vsyncpa [#allocation4], 1 }
 0x2b0   :  { %773 = vsyncpa [#allocation7], 1 }
 0x2b1   :  { %774 = vsyncpa [#allocation5], 1 }

</bundles_post_ra>
